<compile_context>
chip_gen: v7x
topology: tpu7x:2x2x1
jax: 0.10.0
libtpu: 0.0.40
codegen_flags: <defaults>
</compile_context>

<pallas_src>
import jax
import jax.numpy as jnp
from jax.experimental import pallas as pl
from jax.experimental.pallas import tpu as pltpu


def _embracenet_kernel(x_ref, u_ref, cum_ref, o_ref):
    # x_ref:   (m, TB, TC)  modality features
    # u_ref:   (TB, TC)     uniform randoms in [0, 1)
    # cum_ref: (TB, m)      per-batch cumulative selection probabilities
    # o_ref:   (TB, TC)     embraced output
    m = x_ref.shape[0]
    cum = cum_ref[...]                               # (TB, m)   f32
    # Scale u into [0, total) so samples always land inside a valid bucket
    # even when the float cumsum total != 1 exactly.
    u_s = u_ref[...] * cum[:, m - 1:m]               # (TB, TC)  f32

    # Descending where-chain: result = x[min{i : u_s < cum[i]}], default x[m-1].
    # One compare + one select per modality; missing modalities (zero-width
    # buckets) are never chosen.
    acc = x_ref[m - 1]                               # (TB, TC)
    for i in range(m - 2, -1, -1):
        acc = jnp.where(u_s < cum[:, i:i + 1], x_ref[i], acc)
    o_ref[...] = acc


def _choose_tile(dim, target, align):
    """Largest divisor of `dim` that is a multiple of `align` and <= target,
    falling back to the full dimension (always a legal block shape)."""
    if dim <= target:
        return dim
    t = (target // align) * align
    while t >= align:
        if dim % t == 0:
            return t
        t -= align
    return dim


def embracenet_forward(x, key, *, tb_target=256, tc_target=2048):
    """EmbraceNet forward.  x: (m, b, c) float array, key: JAX PRNG key -> (b, c)."""
    m, b, c = x.shape

    # ---- tiny host-side probability computation (m*b floats) ---------------
    avail = jnp.max(jnp.abs(x.astype(jnp.float32)), axis=-1) > 0.0   # (m, b)
    p = avail.astype(jnp.float32)                                    # (m, b)
    m_vec = jnp.maximum(jnp.sum(p, axis=0, keepdims=True), 1.0)      # guard /0
    p = p / m_vec
    cum = jnp.cumsum(p, axis=0).T                                    # (b, m)

    # ---- per-(batch, feature) uniforms --------------------------------------
    u = jax.random.uniform(key, (b, c), dtype=jnp.float32)           # [0, 1)

    # ---- tiling: batch on sublanes (mult. of 8), features on lanes (mult. of 128)
    tb = _choose_tile(b, tb_target, 8)
    tc = _choose_tile(c, tc_target, 128)
    grid = (b // tb, c // tc)

    itemsize = jnp.dtype(x.dtype).itemsize
    tile_bytes = (2 * m * tb * tc * itemsize        # x  (double-buffered)
                  + 2 * tb * tc * 4                 # u
                  + 2 * tb * m * 4                  # cum
                  + 2 * tb * tc * itemsize)         # out
    vmem_limit = int(min(max(2 * tile_bytes, 16 << 20), 100 << 20))

    return pl.pallas_call(
        _embracenet_kernel,
        out_shape=jax.ShapeDtypeStruct((b, c), x.dtype),
        grid=grid,
        in_specs=[
            pl.BlockSpec((m, tb, tc), lambda i, j: (0, i, j)),   # x
            pl.BlockSpec((tb, tc), lambda i, j: (i, j)),         # u
            pl.BlockSpec((tb, m), lambda i, j: (i, 0)),          # cum
        ],
        out_specs=pl.BlockSpec((tb, tc), lambda i, j: (i, j)),
        compiler_params=pltpu.CompilerParams(
            dimension_semantics=("parallel", "parallel"),
            vmem_limit_bytes=vmem_limit,
        ),
    )(x, u, cum)


if __name__ == "__main__":
    # Small shapes consistent with the forward: m modalities, b batch, c features.
    m, b, c = 3, 8, 256
    key = jax.random.PRNGKey(0)
    kx, ku = jax.random.split(key)
    x = jax.random.normal(kx, (m, b, c), dtype=jnp.float32)
    # Simulate missing data: modality 1 of batch element 2 is all zeros,
    # and batch element 5 has ALL modalities zeroed (no modality available).
    x = x.at[1, 2, :].set(0.0)
    x = x.at[:, 5, :].set(0.0)

    e = embracenet_forward(x, ku)
    e = jax.block_until_ready(e)

    # Sanity checks:
    assert e.shape == (b, c)
    # Every output element equals the value of some modality at that position
    # (embracement = per-(batch, feature) modality select).
    matches_some_modality = jnp.any(x == e[None, :, :], axis=0)
    assert bool(jnp.all(matches_some_modality))
    # The zeroed-out modality 1 must never be selected for batch element 2:
    # each output element of that row matches modality 0 or modality 2.
    row_ok = (e[2] == x[0, 2]) | (e[2] == x[2, 2])
    assert bool(jnp.all(row_ok))
    # Fully-missing batch element produces zeros (guarded, no NaN).
    assert bool(jnp.all(e[5] == 0.0))

    print("KERNEL_OK")
</pallas_src>

<mosaic_0001>
module attributes {stable_mosaic.version = 11 : i64} {
  func.func @_embracenet_kernel(%arg0: i32, %arg1: i32, %arg2: memref<3x8x256xf32, #tpu.memory_space<vmem>>, %arg3: memref<8x256xf32, #tpu.memory_space<vmem>>, %arg4: memref<8x3xf32, #tpu.memory_space<vmem>>, %arg5: memref<8x256xf32, #tpu.memory_space<vmem>>) attributes {dimension_semantics = [#tpu.dimension_semantics<parallel>, #tpu.dimension_semantics<parallel>], iteration_bounds = array<i64: 1, 1>, scalar_prefetch = 0 : i64, scratch_operands = 0 : i64, tpu.core_type = #tpu.core_type<tc>, window_params = [{transform_indices = @transform_0, window_bounds = array<i64: 3, 8, 256>}, {transform_indices = @transform_1, window_bounds = array<i64: 8, 256>}, {transform_indices = @transform_2, window_bounds = array<i64: 8, 3>}, {transform_indices = @transform_3, window_bounds = array<i64: 8, 256>}]} {
    %c0 = arith.constant 0 : index
    %c0_0 = arith.constant 0 : index
    %0 = vector.load %arg4[%c0, %c0_0] : memref<8x3xf32, #tpu.memory_space<vmem>>, vector<8x3xf32>
    %c0_1 = arith.constant 0 : index
    %c0_2 = arith.constant 0 : index
    %1 = vector.load %arg3[%c0_1, %c0_2] : memref<8x256xf32, #tpu.memory_space<vmem>>, vector<8x256xf32>
    %2 = vector.extract_strided_slice %0 {offsets = [0, 2], sizes = [8, 1], strides = [1, 1]} : vector<8x3xf32> to vector<8x1xf32>
    %3 = vector.broadcast %2 : vector<8x1xf32> to vector<8x256xf32>
    %4 = arith.mulf %1, %3 : vector<8x256xf32>
    %c2 = arith.constant 2 : index
    %c0_3 = arith.constant 0 : index
    %c0_4 = arith.constant 0 : index
    %5 = vector.load %arg2[%c2, %c0_3, %c0_4] : memref<3x8x256xf32, #tpu.memory_space<vmem>>, vector<1x8x256xf32>
    %6 = vector.shape_cast %5 : vector<1x8x256xf32> to vector<8x256xf32>
    %7 = vector.extract_strided_slice %0 {offsets = [0, 1], sizes = [8, 1], strides = [1, 1]} : vector<8x3xf32> to vector<8x1xf32>
    %8 = vector.broadcast %7 : vector<8x1xf32> to vector<8x256xf32>
    %9 = arith.cmpf olt, %4, %8 : vector<8x256xf32>
    %c1 = arith.constant 1 : index
    %c0_5 = arith.constant 0 : index
    %c0_6 = arith.constant 0 : index
    %10 = vector.load %arg2[%c1, %c0_5, %c0_6] : memref<3x8x256xf32, #tpu.memory_space<vmem>>, vector<1x8x256xf32>
    %11 = vector.shape_cast %10 : vector<1x8x256xf32> to vector<8x256xf32>
    %12 = arith.select %9, %11, %6 : vector<8x256xi1>, vector<8x256xf32>
    %13 = vector.extract_strided_slice %0 {offsets = [0, 0], sizes = [8, 1], strides = [1, 1]} : vector<8x3xf32> to vector<8x1xf32>
    %14 = vector.broadcast %13 : vector<8x1xf32> to vector<8x256xf32>
    %15 = arith.cmpf olt, %4, %14 : vector<8x256xf32>
    %c0_7 = arith.constant 0 : index
    %c0_8 = arith.constant 0 : index
    %c0_9 = arith.constant 0 : index
    %16 = vector.load %arg2[%c0_7, %c0_8, %c0_9] : memref<3x8x256xf32, #tpu.memory_space<vmem>>, vector<1x8x256xf32>
    %17 = vector.shape_cast %16 : vector<1x8x256xf32> to vector<8x256xf32>
    %18 = arith.select %15, %17, %12 : vector<8x256xi1>, vector<8x256xf32>
    %c0_10 = arith.constant 0 : index
    %c0_11 = arith.constant 0 : index
    %19 = vector.load %arg5[%c0_10, %c0_11] : memref<8x256xf32, #tpu.memory_space<vmem>>, vector<8x256xf32>
    tpu.vector_store %arg5[%c0_10, %c0_11], %18 {strides = array<i32>} : memref<8x256xf32, #tpu.memory_space<vmem>>, vector<8x256xf32>,
    return
  }
  func.func @transform_0(%arg0: i32, %arg1: i32) -> (i32, i32, i32) {
    %c0_i32 = arith.constant 0 : i32
    %c0_i32_0 = arith.constant 0 : i32
    return %c0_i32, %arg0, %arg1 : i32, i32, i32
  }
  func.func @transform_1(%arg0: i32, %arg1: i32) -> (i32, i32) {
    %c0_i32 = arith.constant 0 : i32
    return %arg0, %arg1 : i32, i32
  }
  func.func @transform_2(%arg0: i32, %arg1: i32) -> (i32, i32) {
    %c0_i32 = arith.constant 0 : i32
    %c0_i32_0 = arith.constant 0 : i32
    return %arg0, %c0_i32 : i32, i32
  }
  func.func @transform_3(%arg0: i32, %arg1: i32) -> (i32, i32) {
    %c0_i32 = arith.constant 0 : i32
    return %arg0, %arg1 : i32, i32
  }
}

</mosaic_0001>

<bundles_post_ra>
// kernel: tpu_custom_call.1
= control target key start
LH: loop header
LB: loop body
LE: loop exit
PB: predicated region body
PF: predicated region fallthrough
CT: control target
= control target key end

     0   :  { %8 = vsyncpa [#allocation3], 0  ;;  %s244_s0 = inlined_call_operand.hbm [shape: f32[3,8,256], index: 0, kind: input, shape index: {}]   ;;  %s245_s1 = inlined_call_operand.hbm [shape: f32[8,256], index: 1, kind: input, shape index: {}]   ;;  %s246_s2 = inlined_call_operand.vmem [shape: f32[8,3], index: 2, kind: input, shape index: {}]   ;;  %s247_s3 = inlined_call_operand.hbm [shape: f32[8,256], index: 3, kind: output, shape index: {}]  }
   0x1   :  { %9 = vsyncpa [#allocation6], 0 }
   0x2   :  { %10 = vsyncpa [#allocation4], 0  ;;  %s177_s12 = smov [#allocation2]   ;;  %s105_s16 = scalar_lea.hbm %s244_s0, 768 }
   0x3   :  { %s16_s13 = sshll.u32 %s177_s12, 4  ;;  %p106_p0 = scmp.ne.s32.totalorder %s244_s0, %s105_s16  ;;  %s17_s13 = int_to_ptr.vmem [resolvable:$true] %s16_s13 }
   0x4   :  { %p109_p1 = scmp.lt.u32.totalorder %s105_s16, %s244_s0 }
   0x6   :  { %p111_p2 = pnand %p109_p1, %p106_p0 }
   0x8   :  { %114 = shalt.err (!%p111_p2)
}
   0x9   :  { %s115_s21 = scalar_lea.vmem %s17_s13, 768  ;;  %p120_p4 = scmp.lt.s32.totalorder %s17_s13, %s17_s13 }
   0xa   :  { %p116_p3 = scmp.ne.s32.totalorder %s17_s13, %s115_s21  ;;  %p121_p5 = scmp.lt.s32.totalorder %s115_s21, %s115_s21 }
   0xc   :  { %p122_p6 = por %p121_p5, %p120_p4 }
   0xe   :  { %p123_p7 = pnand %p122_p6, %p116_p3 }
  0x10   :  { %126 = shalt.err (!%p123_p7)
}
  0x11   :  { %s178_s22 = smov 256   ;;  %s179_s23 = smov 16  }
  0x12   :  { %22 = dma.hbm_to_vmem [thread:$0]  %s244_s0, 768, %s17_s13, [#allocation3], %s178_s22, %s178_s22, %s179_s23  }
  0x13   :  { %s180_s26 = smov [#allocation5]   ;;  %s127_s30 = scalar_lea.hbm %s245_s1, 256 }
  0x14   :  { %s29_s27 = sshll.u32 %s180_s26, 4  ;;  %p128_p8 = scmp.ne.s32.totalorder %s245_s1, %s127_s30  ;;  %s30_s27 = int_to_ptr.vmem [resolvable:$true] %s29_s27 }
  0x15   :  { %p131_p9 = scmp.lt.u32.totalorder %s127_s30, %s245_s1 }
  0x17   :  { %p133_p10 = pnand %p131_p9, %p128_p8 }
  0x19   :  { %136 = shalt.err (!%p133_p10)
}
  0x1a   :  { %s137_s8 = scalar_lea.vmem %s30_s27, 256  ;;  %p142_p12 = scmp.lt.s32.totalorder %s30_s27, %s30_s27 }
  0x1b   :  { %p138_p11 = scmp.ne.s32.totalorder %s30_s27, %s137_s8  ;;  %p143_p13 = scmp.lt.s32.totalorder %s137_s8, %s137_s8 }
  0x1d   :  { %p144_p0 = por %p143_p13, %p142_p12 }
  0x1f   :  { %p145_p1 = pnand %p144_p0, %p138_p11 }
  0x21   :  { %148 = shalt.err (!%p145_p1)
}
  0x22   :  { %32 = dma.hbm_to_vmem [thread:$0]  %s245_s1, 256, %s30_s27, [#allocation6]  }
  0x23   :  { %171 = dma.done.wait [#allocation3], 768  }
  0x24   :  { %172 = vsyncadd [#allocation3], 4294966528 }
  0x25   :  { %173 = dma.done.wait [#allocation6], 256  }
  0x26   :  { %174 = vsyncadd [#allocation6], 4294967040  ;;  %v181_v0 = vmov 2   ;;  %v182_v1 = vmov 0   ;;  %v41_v2 = vld [vmem:[%s246_s2] sm:$0xff]  ;;  %v183_v3 = vmov 1  }
  0x27   :  { %101 = vset.pattern.permute.xlu0 %v181_v0  ;;  %103 = vset.pattern.permute.xlu1 %v182_v1  ;;  %v42_v4 = vld [vmem:[#allocation5] sm:$0xff]  ;;  %v43_v5 = vld [vmem:[#allocation5 + $0x8] sm:$0xff]  ;;  %v52_v9 = vld [vmem:[#allocation2 + $0x20] sm:$0xff]  ;;  %s184_s1 = smov [#allocation7]  }
  0x28   :  { %46 = vperm.xlu0 %101, %v41_v2   ;;  %66 = vperm.xlu1 %103, %v41_v2   ;;  %v53_v11 = vld [vmem:[#allocation2 + $0x28] sm:$0xff]  ;;  %v61_v12 = vld [vmem:[#allocation2 + $0x10] sm:$0xff]  ;;  %v62_v13 = vld [vmem:[#allocation2 + $0x18] sm:$0xff]  ;;  %s83_s12 = sshll.u32 %s184_s1, 4  ;;  %s84_s12 = int_to_ptr.vmem [resolvable:$true] %s83_s12 }
  0x29   :  { %v71_v15 = vld [vmem:[#allocation2] sm:$0xff]  ;;  %v72_v16 = vld [vmem:[#allocation2 + $0x8] sm:$0xff]  ;;  %s149_s2 = scalar_lea.vmem %s84_s12, 256  ;;  %p154_p3 = scmp.lt.s32.totalorder %s84_s12, %s84_s12 }
  0x2a   :  { %p150_p2 = scmp.ne.s32.totalorder %s84_s12, %s149_s2  ;;  %p155_p4 = scmp.lt.s32.totalorder %s149_s2, %s149_s2 }
  0x2c   :  { %102 = vset.pattern.permute.xlu0 %v183_v3  ;;  %p156_p5 = por %p155_p4, %p154_p3 }
  0x2d   :  { %55 = vperm.xlu0 %102, %v41_v2  }
  0x2e   :  { %p157_p6 = pnand %p156_p5, %p150_p2 }
  0x31   :  { %104 = vset.pattern.permute.xlu0 %v182_v1 }
  0xa7   :  { %v47_v6 = vpop.permute.xlu0 %46  ;;  %v67_v10 = vpop.permute.xlu1 %66 }
  0xa8   :  { %v49_v7 = vmul.f32 %v47_v6, %v42_v4  ;;  %v50_v8 = vmul.f32 %v47_v6, %v43_v5 }
  0xaa   :  { %vm69_vm2 = vcmp.lt.f32.partialorder %v49_v7, %v67_v10  ;;  %vm70_vm3 = vcmp.lt.f32.partialorder %v50_v8, %v67_v10 }
  0xac   :  { %v56_v14 = vpop.permute.xlu0 %55 }
  0xad   :  { %vm58_vm0 = vcmp.lt.f32.partialorder %v49_v7, %v56_v14  ;;  %vm59_vm1 = vcmp.lt.f32.partialorder %v50_v8, %v56_v14 }
  0xae   :  { %v63_v17 = vsel %vm58_vm0, %v61_v12, %v52_v9  ;;  %v64_v18 = vsel %vm59_vm1, %v62_v13, %v53_v11 }
  0xaf   :  { %v73_v19 = vsel %vm69_vm2, %v71_v15, %v63_v17  ;;  %v74_v20 = vsel %vm70_vm3, %v72_v16, %v64_v18 }
  0xb0   :  { %75 = vst [vmem:[#allocation7] sm:$0xff] %v73_v19  ;;  %76 = vst [vmem:[#allocation7 + $0x8] sm:$0xff] %v74_v20 }
  0xb1   :  { %160 = shalt.err (!%p157_p6)
}
  0xb2   :  { %s161_s15 = scalar_lea.hbm %s247_s3, 256 }
  0xb3   :  { %p162_p7 = scmp.ne.s32.totalorder %s247_s3, %s161_s15  ;;  %p165_p8 = scmp.lt.u32.totalorder %s161_s15, %s247_s3 }
  0xb5   :  { %p167_p9 = pnand %p165_p8, %p162_p7 }
  0xb7   :  { %170 = shalt.err (!%p167_p9)
}
  0xb8   :  { %86 = dma.vmem_to_hbm [thread:$0]  %s84_s12, 256, %s247_s3, [#allocation4]  }
  0xb9   :  { %175 = dma.done.wait [#allocation4], 256  }
  0xba   :  { %176 = vsyncadd [#allocation4], 4294967040 }
  0xbb   :  { %90 = vsyncpa [#allocation3], 1 }
  0xbc   :  { %91 = vsyncpa [#allocation6], 1 }
  0xbd   :  { %92 = vsyncpa [#allocation4], 1 }

</bundles_post_ra>
